<compile_context>
chip_gen: v6e
topology: v6e:2x2x1
jax: 0.10.0
libtpu: 0.0.40
codegen_flags: <defaults>
</compile_context>

<pallas_src>
import jax
import jax.numpy as jnp
from jax.experimental import pallas as pl
from jax.experimental.pallas import tpu as pltpu

_LANES = 128
_SUBLANES = 8
_MAX_ROWS_PER_STEP = 1024       # 1024x128 f32 tile = 512 KiB per input stream
_SENTINEL = 1e9                 # pad value far outside any normalized gate -> membership == 0


def _gate_kernel(p_ref, x1_ref, x2_ref, y_ref, acc_ref):
    """Grid = (B, num_chunks). Axis 0 = batch (parallel), axis 1 = cell-row chunks (reduction).

    p_ref  : SMEM (8,) f32 scalar-prefetch:
             [0]=hk*low1 [1]=hk*upp1 [2]=hk*low2 [3]=hk*upp2 [4]=hk(=0.5*k)
             [5]=lin_w   [6]=lin_b   [7]=1/(16*N_cells)
    x1_ref : VMEM (1, 1, R, 128) tile -- gate dim1 cell rows for current sample/chunk
    x2_ref : VMEM (1, 1, R, 128) tile -- gate dim2 cell rows for current sample/chunk
    y_ref  : VMEM (1, 1, 128) output (y_pred broadcast across lanes; wrapper keeps lane 0)
    acc_ref: VMEM (R, 128) f32 running per-lane/per-sublane (unscaled) membership sums
    """
    j = pl.program_id(1)

    @pl.when(j == 0)
    def _():
        acc_ref[...] = jnp.zeros_like(acc_ref)

    hk = p_ref[4]
    x1 = x1_ref[0, 0, :, :]   # (R, 128)
    x2 = x2_ref[0, 0, :, :]   # (R, 128)

    # prod of 4 sigmoids == (1/16) * prod of (1 + tanh(0.5*k*arg)); the 1/16 is folded into
    # p_ref[7]. 4 tanh pushes (EUP) + a handful of VPU mul/add per vreg -- no exp overflow,
    # no reciprocal.
    t1 = hk * x1
    t2 = hk * x2
    m = (
        (1.0 + jnp.tanh(t1 - p_ref[0]))
        * (1.0 + jnp.tanh(p_ref[1] - t1))
        * (1.0 + jnp.tanh(t2 - p_ref[2]))
        * (1.0 + jnp.tanh(p_ref[3] - t2))
    )

    # Hot loop: plain VPU elementwise accumulate, no cross-lane reduce.
    acc_ref[...] += m

    @pl.when(j == pl.num_programs(1) - 1)
    def _():
        # Single cross-sublane + cross-lane reduction, only at finalize.
        total = jnp.sum(acc_ref[...], axis=0, keepdims=True)     # (1, 128)
        total = jnp.sum(total, axis=1, keepdims=True)            # (1, 1)
        feature = total * p_ref[7]                               # mean membership (gate fraction)
        logit = feature * p_ref[5] + p_ref[6]                    # Linear(1, 1)
        y = 1.0 / (1.0 + jnp.exp(-logit))                        # sigmoid -> y_pred, (1, 1)
        y_ref[...] = jnp.broadcast_to(y.reshape(1, 1, 1), y_ref.shape)


def _plan_tiles(n_cells, cap=_MAX_ROWS_PER_STEP):
    """Pick (rows_per_step, padded_total_rows).

    rows_per_step is always a multiple of 8 and <= cap; padded_total_rows is a multiple of
    rows_per_step (padding uses a sentinel with membership exactly 0), so there is never a
    single-giant-chunk fallback.
    """
    total_rows = -(-n_cells // _LANES)                       # ceil(N / 128)
    r8 = -(-total_rows // _SUBLANES) * _SUBLANES             # round up to multiple of 8
    if r8 <= cap:
        return r8, r8                                        # single chunk, full extent
    best_r, best_pad = None, None
    r = cap
    while r >= 256:                                          # 256..1024-row blocks (85%+ roofline)
        padded = -(-total_rows // r) * r
        if best_pad is None or padded < best_pad:
            best_r, best_pad = r, padded
        if padded == total_rows:
            break
        r -= _SUBLANES
    return best_r, best_pad


def pack_features(x, padded_total_rows):
    """One-time layout pass: (B, N, D) -> feature-major (B, D, padded_total_rows, 128).

    In production this should be hoisted outside the step (or the data produced in this
    layout upstream); the Pallas kernel itself only reads the two gate dims (8 B/cell).
    Padding uses a sentinel far outside the gate so padded cells contribute exactly 0.
    """
    B, N, D = x.shape
    n_pad = padded_total_rows * _LANES
    xt = jnp.swapaxes(x, 1, 2)                               # (B, D, N)
    if n_pad > N:
        pad = jnp.full((B, D, n_pad - N), _SENTINEL, dtype=x.dtype)
        xt = jnp.concatenate([xt, pad], axis=2)
    return xt.reshape(B, D, padded_total_rows, _LANES)


def single_gate_forward_packed(x_t, n_cells, rows_per_step, params, gate):
    """x_t: (B, D, padded_total_rows, 128) float32 feature-major. Returns y_pred (B, 1)."""
    B, D, rows_total, lanes = x_t.shape
    assert lanes == _LANES and rows_total % rows_per_step == 0
    num_chunks = rows_total // rows_per_step

    (dim1, low1, upp1), (dim2, low2, upp2) = gate
    hk = 0.5 * float(params["logistic_k"])

    p = jnp.array(
        [hk * low1, hk * upp1, hk * low2, hk * upp2,
         hk, params["linear_w"], params["linear_b"], 1.0 / (16.0 * n_cells)],
        dtype=jnp.float32,
    )

    y = pl.pallas_call(
        _gate_kernel,
        out_shape=jax.ShapeDtypeStruct((B, 1, _LANES), jnp.float32),
        grid_spec=pltpu.PrefetchScalarGridSpec(
            num_scalar_prefetch=1,                            # p lands in SMEM
            grid=(B, num_chunks),
            in_specs=[
                # Two contiguous (1,1,rows,128) DMAs per step, selecting dim1/dim2 directly
                # from the feature-major layout -- no per-step packing pass.
                pl.BlockSpec((1, 1, rows_per_step, _LANES),
                             lambda b, j, p, d=dim1: (b, d, j, 0)),
                pl.BlockSpec((1, 1, rows_per_step, _LANES),
                             lambda b, j, p, d=dim2: (b, d, j, 0)),
            ],
            out_specs=pl.BlockSpec((1, 1, _LANES), lambda b, j, p: (b, 0, 0)),
            scratch_shapes=[pltpu.VMEM((rows_per_step, _LANES), jnp.float32)],
        ),
        compiler_params=pltpu.CompilerParams(
            # batch axis parallel (feeds v7x's 2nd TensorCore), cell-chunk axis = reduction
            dimension_semantics=("parallel", "arbitrary"),
        ),
        # TODO(synk): v5e-only micro-opt: pipeline_mode=pl.Buffered(3) on the input specs.
    )(p, x_t, x_t)

    return y[:, :, 0]                                         # (B, 1)


def single_gate_forward(x, params, gate):
    """Convenience wrapper from the module's native layout x: (B, N_cells, D)."""
    B, N, D = x.shape
    rows_per_step, rows_total = _plan_tiles(N)
    x_t = pack_features(x, rows_total)   # one-time layout pass; hoist upstream in production
    return single_gate_forward_packed(x_t, N, rows_per_step, params, gate)


def single_gate_forward_ref(x, params, gate):
    """Pure-JAX reference of the same forward (for correctness check)."""
    (dim1, low1, upp1), (dim2, low2, upp2) = gate
    x1 = x[:, :, dim1]
    x2 = x[:, :, dim2]
    k = params["logistic_k"]
    m = (
        jax.nn.sigmoid(k * (x1 - low1))
        * jax.nn.sigmoid(k * (upp1 - x1))
        * jax.nn.sigmoid(k * (x2 - low2))
        * jax.nn.sigmoid(k * (upp2 - x2))
    )
    feature = jnp.mean(m, axis=1, keepdims=True)              # (B, 1)
    return jax.nn.sigmoid(feature * params["linear_w"] + params["linear_b"])


if __name__ == "__main__":
    key = jax.random.PRNGKey(0)

    # Small shapes consistent with the module: B samples, N cells, D markers.
    B, N, D = 2, 1024, 4
    x = jax.random.uniform(key, (B, N, D), dtype=jnp.float32)     # normalized [0,1] data

    # Deterministic synthetic parameters (no checkpoint): gate cut values come from
    # sigmoid(raw) as in DepthOneModel's parameterization.
    raw = jnp.array([-1.0, 1.0, -0.5, 1.5], dtype=jnp.float32)    # low1, upp1, low2, upp2 (raw)
    cuts = jax.nn.sigmoid(raw)
    gate = (
        (0, float(cuts[0]), float(cuts[1])),   # dim1 = feature 0
        (1, float(cuts[2]), float(cuts[3])),   # dim2 = feature 1
    )
    params = {
        "logistic_k": 100.0,   # sharpness of the soft gate
        "linear_w": 1.5,       # Linear(1,1) weight (deterministic init)
        "linear_b": -0.3,      # Linear(1,1) bias
    }

    y = single_gate_forward(x, params, gate)
    y = jax.block_until_ready(y)

    y_ref = single_gate_forward_ref(x, params, gate)
    assert y.shape == (B, 1)
    assert jnp.allclose(y, y_ref, atol=1e-5, rtol=1e-5), (y, y_ref)

    print("KERNEL_OK")
</pallas_src>

<mosaic_0001>
module attributes {stable_mosaic.version = 11 : i64} {
  func.func @_gate_kernel(%arg0: i32, %arg1: i32, %arg2: memref<8xf32, #tpu.memory_space<smem>>, %arg3: memref<1x1x8x128xf32, #tpu.memory_space<vmem>>, %arg4: memref<1x1x8x128xf32, #tpu.memory_space<vmem>>, %arg5: memref<1x1x128xf32, #tpu.memory_space<vmem>>, %arg6: memref<8x128xf32, #tpu.memory_space<vmem>>) attributes {dimension_semantics = [#tpu.dimension_semantics<parallel>, #tpu.dimension_semantics<arbitrary>], iteration_bounds = array<i64: 2, 1>, scalar_prefetch = 1 : i64, scratch_operands = 1 : i64, tpu.core_type = #tpu.core_type<tc>, window_params = [{transform_indices = @transform_0, window_bounds = array<i64: 1, 1, 8, 128>}, {transform_indices = @transform_1, window_bounds = array<i64: 1, 1, 8, 128>}, {transform_indices = @transform_2, window_bounds = array<i64: 1, 1, 128>}]} {
    %c0_i32 = arith.constant 0 : i32
    %0 = arith.cmpi eq, %arg1, %c0_i32 : i32
    %1 = arith.extui %0 : i1 to i32
    %c0_i32_0 = arith.constant 0 : i32
    %2 = arith.cmpi ne, %1, %c0_i32_0 : i32
    scf.if %2 {
      %cst_18 = arith.constant 0.000000e+00 : f32
      %45 = vector.broadcast %cst_18 : f32 to vector<8x128xf32>
      %c0_19 = arith.constant 0 : index
      %c0_20 = arith.constant 0 : index
      %46 = vector.load %arg6[%c0_19, %c0_20] : memref<8x128xf32, #tpu.memory_space<vmem>>, vector<8x128xf32>
      tpu.vector_store %arg6[%c0_19, %c0_20], %45 {strides = array<i32>} : memref<8x128xf32, #tpu.memory_space<vmem>>, vector<8x128xf32>,
    } else {
    }
    %c4 = arith.constant 4 : index
    %3 = memref.load %arg2[%c4] : memref<8xf32, #tpu.memory_space<smem>>
    %c0 = arith.constant 0 : index
    %c0_1 = arith.constant 0 : index
    %c0_2 = arith.constant 0 : index
    %c0_3 = arith.constant 0 : index
    %4 = vector.load %arg3[%c0, %c0_1, %c0_2, %c0_3] : memref<1x1x8x128xf32, #tpu.memory_space<vmem>>, vector<1x1x8x128xf32>
    %5 = vector.shape_cast %4 : vector<1x1x8x128xf32> to vector<8x128xf32>
    %c0_4 = arith.constant 0 : index
    %c0_5 = arith.constant 0 : index
    %c0_6 = arith.constant 0 : index
    %c0_7 = arith.constant 0 : index
    %6 = vector.load %arg4[%c0_4, %c0_5, %c0_6, %c0_7] : memref<1x1x8x128xf32, #tpu.memory_space<vmem>>, vector<1x1x8x128xf32>
    %7 = vector.shape_cast %6 : vector<1x1x8x128xf32> to vector<8x128xf32>
    %8 = vector.broadcast %3 : f32 to vector<8x128xf32>
    %9 = arith.mulf %8, %5 : vector<8x128xf32>
    %10 = vector.broadcast %3 : f32 to vector<8x128xf32>
    %11 = arith.mulf %10, %7 : vector<8x128xf32>
    %c0_8 = arith.constant 0 : index
    %12 = memref.load %arg2[%c0_8] : memref<8xf32, #tpu.memory_space<smem>>
    %13 = vector.broadcast %12 : f32 to vector<8x128xf32>
    %14 = arith.subf %9, %13 : vector<8x128xf32>
    %15 = math.tanh %14 : vector<8x128xf32>
    %cst = arith.constant 1.000000e+00 : f32
    %16 = vector.broadcast %cst : f32 to vector<8x128xf32>
    %17 = arith.addf %16, %15 : vector<8x128xf32>
    %c1 = arith.constant 1 : index
    %18 = memref.load %arg2[%c1] : memref<8xf32, #tpu.memory_space<smem>>
    %19 = vector.broadcast %18 : f32 to vector<8x128xf32>
    %20 = arith.subf %19, %9 : vector<8x128xf32>
    %21 = math.tanh %20 : vector<8x128xf32>
    %cst_9 = arith.constant 1.000000e+00 : f32
    %22 = vector.broadcast %cst_9 : f32 to vector<8x128xf32>
    %23 = arith.addf %22, %21 : vector<8x128xf32>
    %24 = arith.mulf %17, %23 : vector<8x128xf32>
    %c2 = arith.constant 2 : index
    %25 = memref.load %arg2[%c2] : memref<8xf32, #tpu.memory_space<smem>>
    %26 = vector.broadcast %25 : f32 to vector<8x128xf32>
    %27 = arith.subf %11, %26 : vector<8x128xf32>
    %28 = math.tanh %27 : vector<8x128xf32>
    %cst_10 = arith.constant 1.000000e+00 : f32
    %29 = vector.broadcast %cst_10 : f32 to vector<8x128xf32>
    %30 = arith.addf %29, %28 : vector<8x128xf32>
    %31 = arith.mulf %24, %30 : vector<8x128xf32>
    %c3 = arith.constant 3 : index
    %32 = memref.load %arg2[%c3] : memref<8xf32, #tpu.memory_space<smem>>
    %33 = vector.broadcast %32 : f32 to vector<8x128xf32>
    %34 = arith.subf %33, %11 : vector<8x128xf32>
    %35 = math.tanh %34 : vector<8x128xf32>
    %cst_11 = arith.constant 1.000000e+00 : f32
    %36 = vector.broadcast %cst_11 : f32 to vector<8x128xf32>
    %37 = arith.addf %36, %35 : vector<8x128xf32>
    %38 = arith.mulf %31, %37 : vector<8x128xf32>
    %c0_12 = arith.constant 0 : index
    %c0_13 = arith.constant 0 : index
    %39 = vector.load %arg6[%c0_12, %c0_13] : memref<8x128xf32, #tpu.memory_space<vmem>>, vector<8x128xf32>
    %40 = arith.addf %39, %38 : vector<8x128xf32>
    %c0_14 = arith.constant 0 : index
    %c0_15 = arith.constant 0 : index
    %41 = vector.load %arg6[%c0_14, %c0_15] : memref<8x128xf32, #tpu.memory_space<vmem>>, vector<8x128xf32>
    tpu.vector_store %arg6[%c0_14, %c0_15], %40 {strides = array<i32>} : memref<8x128xf32, #tpu.memory_space<vmem>>, vector<8x128xf32>,
    %c0_i32_16 = arith.constant 0 : i32
    %42 = arith.cmpi eq, %arg1, %c0_i32_16 : i32
    %43 = arith.extui %42 : i1 to i32
    %c0_i32_17 = arith.constant 0 : i32
    %44 = arith.cmpi ne, %43, %c0_i32_17 : i32
    scf.if %44 {
      %c0_18 = arith.constant 0 : index
      %c0_19 = arith.constant 0 : index
      %45 = vector.load %arg6[%c0_18, %c0_19] : memref<8x128xf32, #tpu.memory_space<vmem>>, vector<8x128xf32>
      %cst_20 = arith.constant dense<0.000000e+00> : vector<128xf32>
      %46 = vector.multi_reduction <add>, %45, %cst_20 [0] : vector<8x128xf32> to vector<128xf32>
      %47 = vector.shape_cast %46 : vector<128xf32> to vector<1x128xf32>
      %cst_21 = arith.constant dense<0.000000e+00> : vector<1xf32>
      %48 = vector.multi_reduction <add>, %47, %cst_21 [1] : vector<1x128xf32> to vector<1xf32>
      %49 = vector.shape_cast %48 : vector<1xf32> to vector<1x1xf32>
      %c7 = arith.constant 7 : index
      %50 = memref.load %arg2[%c7] : memref<8xf32, #tpu.memory_space<smem>>
      %51 = vector.broadcast %50 : f32 to vector<1x1xf32>
      %52 = arith.mulf %49, %51 : vector<1x1xf32>
      %c5 = arith.constant 5 : index
      %53 = memref.load %arg2[%c5] : memref<8xf32, #tpu.memory_space<smem>>
      %54 = vector.broadcast %53 : f32 to vector<1x1xf32>
      %55 = arith.mulf %52, %54 : vector<1x1xf32>
      %c6 = arith.constant 6 : index
      %56 = memref.load %arg2[%c6] : memref<8xf32, #tpu.memory_space<smem>>
      %57 = vector.broadcast %56 : f32 to vector<1x1xf32>
      %58 = arith.addf %55, %57 : vector<1x1xf32>
      %cst_22 = arith.constant 0.000000e+00 : f32
      %59 = vector.broadcast %cst_22 : f32 to vector<1x1xf32>
      %60 = arith.subf %59, %58 : vector<1x1xf32>
      %61 = math.exp %60 : vector<1x1xf32>
      %cst_23 = arith.constant 1.000000e+00 : f32
      %62 = vector.broadcast %cst_23 : f32 to vector<1x1xf32>
      %63 = arith.addf %62, %61 : vector<1x1xf32>
      %cst_24 = arith.constant 1.000000e+00 : f32
      %64 = vector.broadcast %cst_24 : f32 to vector<1x1xf32>
      %65 = arith.divf %64, %63 : vector<1x1xf32>
      %66 = vector.shape_cast %65 : vector<1x1xf32> to vector<1x1x1xf32>
      %67 = vector.shape_cast %66 : vector<1x1x1xf32> to vector<1x1x1xf32>
      %68 = vector.broadcast %67 : vector<1x1x1xf32> to vector<1x1x128xf32>
      %c0_25 = arith.constant 0 : index
      %c0_26 = arith.constant 0 : index
      %c0_27 = arith.constant 0 : index
      %69 = vector.load %arg5[%c0_25, %c0_26, %c0_27] : memref<1x1x128xf32, #tpu.memory_space<vmem>>, vector<1x1x128xf32>
      tpu.vector_store %arg5[%c0_25, %c0_26, %c0_27], %68 {strides = array<i32>} : memref<1x1x128xf32, #tpu.memory_space<vmem>>, vector<1x1x128xf32>,
    } else {
    }
    return
  }
  func.func @transform_0(%arg0: i32, %arg1: i32, %arg2: memref<8xf32, #tpu.memory_space<smem>>) -> (i32, i32, i32, i32) {
    %c0_i32 = arith.constant 0 : i32
    %c0_i32_0 = arith.constant 0 : i32
    %c0_i32_1 = arith.constant 0 : i32
    return %arg0, %c0_i32, %arg1, %c0_i32_0 : i32, i32, i32, i32
  }
  func.func @transform_1(%arg0: i32, %arg1: i32, %arg2: memref<8xf32, #tpu.memory_space<smem>>) -> (i32, i32, i32, i32) {
    %c1_i32 = arith.constant 1 : i32
    %c0_i32 = arith.constant 0 : i32
    %c0_i32_0 = arith.constant 0 : i32
    return %arg0, %c1_i32, %arg1, %c0_i32 : i32, i32, i32, i32
  }
  func.func @transform_2(%arg0: i32, %arg1: i32, %arg2: memref<8xf32, #tpu.memory_space<smem>>) -> (i32, i32, i32) {
    %c0_i32 = arith.constant 0 : i32
    %c0_i32_0 = arith.constant 0 : i32
    %c0_i32_1 = arith.constant 0 : i32
    return %arg0, %c0_i32, %c0_i32_0 : i32, i32, i32
  }
}

</mosaic_0001>

<bundles_post_ra>
// kernel: tpu_custom_call.1
= control target key start
LH: loop header
LB: loop body
LE: loop exit
PB: predicated region body
PF: predicated region fallthrough
CT: control target
= control target key end

     0   :  { %s659_s12 = smov [#allocation4]   ;;  %s854_s0 = inlined_call_operand.hbm [shape: f32[8], index: 0, kind: input, shape index: {}]   ;;  %s855_s1 = inlined_call_operand.hbm [shape: f32[2,4,8,128], index: 1, kind: input, shape index: {}]   ;;  %s856_s2 = inlined_call_operand.hbm [shape: f32[2,4,8,128], index: 2, kind: input, shape index: {}]   ;;  %s857_s3 = inlined_call_operand.hbm [shape: f32[2,1,128], index: 3, kind: output, shape index: {}]  }
   0x1   :  { %9 = dma.hbm_to_smem %s854_s0, 16, %s659_s12, [#allocation3] }
   0x2   :  { %621 = dma.done.wait [#allocation3], 16 }
   0x3   :  { %622 = vsyncadd [#allocation3], 4294967280 }
   0x4   :  { %11 = sfence }
   0x5   :  { %12 = vsyncpa [#allocation6], 0 }
   0x6   :  { %14 = vsyncpa [#allocation6 + $0x1], 0 }
   0x7   :  { %15 = vsyncpa [#allocation9], 0 }
   0x8   :  { %17 = vsyncpa [#allocation9 + $0x1], 0 }
   0x9   :  { %18 = vsyncpa [#allocation7], 0 }
   0xa   :  { %20 = vsyncpa [#allocation7 + $0x1], 0  ;;  %s686_s15 = smov 0   ;;  %s688_s16 = smov 0  }
   0xb   :  { %s690_s17 = smov 0   ;;  %s692_s18 = smov 0  }
   0xc   :  { %s694_s19 = smov 0   ;;  %s696_s0 = smov 0  }
   0xd LB: > { %s401_s20 = sadd.s32 4294967295, %s657_s0   ;;  %s402_s21 = sadd.s32 4294967294, %s657_s0   ;;  %s657_s0 = sphi %s696_s0, %s26_s0   ;;  %s653_s19 = sphi %s694_s19, %s869_s19   ;;  %s649_s18 = sphi %s692_s18, %s868_s18   ;;  %s645_s17 = sphi %s690_s17, %s867_s17   ;;  %s641_s16 = sphi %s688_s16, %s866_s16   ;;  %s637_s15 = sphi %s686_s15, %s865_s15  }
   0xe   : > { %s38_s22 = sadd.s32 1, %s653_s19  ;;  %s47_s23 = sadd.s32 1, %s645_s17 }
   0xf   : > { %p40_p0 = scmp.ge.s32.totalorder %s38_s22, 2  ;;  %p54_p1 = scmp.ne.s32.totalorder %s645_s17, %s641_s16 }
  0x10   : > { %p55_p2 = scmp.eq.s32.totalorder %s657_s0, 0  ;;  %p60_p3 = scmp.ne.s32.totalorder %s641_s16, %s637_s15 }
  0x11   : > { %s871_s22 = smov (%p40_p0, %s38_s22), 0  ;;  %p61_p5 = scmp.eq.s32.totalorder %s401_s20, 0 }
  0x12   : > { %p727_p4 = por %p55_p2, %p54_p1  ;;  %s42_s25 = ssub.s32 %s653_s19, %s871_s22 }
  0x13   : > { %p112_p6 = scmp.eq.s32.totalorder %s401_s20, 1  ;;  %p45_p7 = scmp.eq.s32.totalorder %s42_s25, 0 }
  0x14   : > { %p733_p8 = por %p61_p5, %p60_p3  ;;  %p118_p10 = scmp.eq.s32.totalorder %s402_s21, 1 }
  0x15   : > { %p737_p9 = por %p112_p6, %p54_p1  ;;  %p443_p13 = scmp.lt.s32.totalorder %s657_s0, 2 }
  0x16   : > { %s742_s28 = scalar_select %p45_p7, %s645_s17, %s47_s23  }
  0x17   : > { %p744_p11 = por %p118_p10, %p60_p3  ;;  %s751_s30 = sand.u32 1, %s645_s17  }
  0x18   : > { %s405_s4 = sshll.u32 %s751_s30, 3  ;;  %s424_s5 = sshll.u32 %s653_s19, 9 }
  0x19   : > { %s149_s8 = scalar_lea.hbm %s855_s1, %s424_s5  ;;  %s142_s9 = scalar_lea.vmem [#allocation5], %s405_s4 }
  0x1a   : > { %s151_s10 = sshll.u32 %s142_s9, 4  ;;  %p760_p0 = pnand %p443_p13, %p727_p4  ;;  %s152_s10 = int_to_ptr.vmem [resolvable:$true] %s151_s10 }
  0x1b   : > { %p411_p1 = scmp.ge.s32.totalorder %s657_s0, 1  ;;  %p177_p2 = scmp.lt.s32.totalorder %s657_s0, 3 }
  0x1c   : > { %s139_s12 = scalar_lea.sflag [#allocation6], %s751_s30  ;;  %p516_p3 = pneg %p760_p0 }
  0x1d   : > { %s527_s13 = scalar_lea.vmem %s152_s10, 128  ;;  %s660_s14 = smov [#allocation5]  }
  0x1e   : > { %p528_p5 = scmp.ne.s32.totalorder %s152_s10, %s527_s13  ;;  %s532_s20 = sshll.u32 %s660_s14, 4  ;;  %s533_s20 = int_to_ptr.vmem [resolvable:$false] %s532_s20 }
  0x1f   : > { %s534_s21 = scalar_lea.vmem %s533_s20, 256  ;;  %p535_p4 = scmp.lt.s32.totalorder %s152_s10, %s533_s20 }
  0x20   : > { %p530_p6 = pnand %p528_p5, %p516_p3  ;;  %p536_p10 = scmp.lt.s32.totalorder %s534_s21, %s527_s13 }
  0x22   : > { %p531_p7 = pneg %p530_p6  ;;  %p537_p13 = por %p536_p10, %p535_p4 }
  0x24   : > { %p538_p12 = pnand %p537_p13, %p531_p7 }
  0x26   : > { %541 = shalt.err (!%p538_p12)
}
  0x27   : > { %435 = dma.hbm_to_vmem [thread:$0]  (!%p760_p0), %s149_s8, 128, %s152_s10, %s139_s12  }
  0x28   : > { %p778_p5 = pnand %p411_p1, %p177_p2  ;;  %s338_s6 = scalar_lea.hbm %s856_s2, %s424_s5 }
  0x29   : > { %s162_s7 = scalar_lea.vmem [#allocation8], %s405_s4  ;;  %s339_s13 = scalar_lea.hbm %s338_s6, 128 }
  0x2a   : > { %s172_s9 = sshll.u32 %s162_s7, 4  ;;  %s159_s14 = scalar_lea.sflag [#allocation9], %s751_s30  ;;  %s173_s9 = int_to_ptr.vmem [resolvable:$true] %s172_s9 }
  0x2b   : > { %s555_s20 = scalar_lea.vmem %s173_s9, 128  ;;  %s661_s8 = smov [#allocation8]  }
  0x2c   : > { %p556_p12 = scmp.ne.s32.totalorder %s173_s9, %s555_s20  ;;  %s560_s10 = sshll.u32 %s661_s8, 4  ;;  %s561_s10 = int_to_ptr.vmem [resolvable:$false] %s560_s10 }
  0x2d   : > { %s562_s12 = scalar_lea.vmem %s561_s10, 256  ;;  %p563_p1 = scmp.lt.s32.totalorder %s173_s9, %s561_s10 }
  0x2e   : > { %p558_p6 = pnand %p556_p12, %p516_p3  ;;  %p564_p2 = scmp.lt.s32.totalorder %s562_s12, %s555_s20 }
  0x30   : > { %p559_p7 = pneg %p558_p6  ;;  %p565_p4 = por %p564_p2, %p563_p1 }
  0x32   : > { %p566_p10 = pnand %p565_p4, %p559_p7 }
  0x34   : > { %569 = shalt.err (!%p566_p10)
}
  0x35   : > { %438 = dma.hbm_to_vmem [thread:$0]  (!%p760_p0), %s339_s13, 128, %s173_s9, %s159_s14  }
  0x36   : > { %181 = sbr.rel (%p778_p5) target bundleno = 299 (0x12b), region = 28  ;;  %s794_s30 = sand.u32 (!%p778_p5), 1, %s641_s16  }
  0x37   : > { %s412_s4 = sshll.u32 (!%p778_p5), %s794_s30, 3  ;;  %s184_s5 = scalar_lea.sflag (!%p778_p5), [#allocation6], %s794_s30 }
  0x38   : > { %s187_s21 = scalar_lea.vmem (!%p778_p5), [#allocation5], %s412_s4 }
  0x3b   : > { %624 = dma.done.wait (%p733_p8), %s184_s5, 128  }
  0x3c   : > { %626 = vsyncadd (%p733_p8), %s184_s5, 4294967168  ;;  %s193_s11 = scalar_lea.sflag [#allocation9], %s794_s30  ;;  %s196_s24 = scalar_lea.vmem [#allocation8], %s412_s4 }
  0x3d   : > { %628 = dma.done.wait (%p733_p8), %s193_s11, 128  }
  0x3e   : > { %630 = vsyncadd (%p733_p8), %s193_s11, 4294967168  ;;  %s414_s23 = sld [smem:[#allocation4 + $0x4]]  ;;  %v227_v0 = vld [vmem:[%s187_s21] sm:$0xff]  ;;  %v228_v1 = vld [vmem:[%s196_s24] sm:$0xff]  ;;  %s421_s20 = sshll.u32 %s649_s18, 4 }
  0x3f   : > { %s232_s25 = sld [smem:[#allocation4]]  ;;  %s220_s8 = scalar_lea.vmem [#allocation10], %s794_s30 }
  0x40   : > { %s415_s6 = sld [smem:[#allocation4 + $0x1]]  ;;  %s299_s10 = sshll.u32 %s220_s8, 4  ;;  %s300_s10 = int_to_ptr.vmem [resolvable:$true] %s299_s10 }
  0x41   : > { %s416_s7 = sld [smem:[#allocation4 + $0x2]]  ;;  %s812_s5 = scalar_lea.hbm %s857_s3, %s421_s20 }
  0x42   : > { %s417_s9 = sld [smem:[#allocation4 + $0x3]]  ;;  %s287_s21 = scalar_lea.sflag [#allocation7], %s794_s30 }
  0x43   : > { %s418_s26 = sld [smem:[#allocation4 + $0x7]]  ;;  %s571_s11 = scalar_lea.vmem %s300_s10, 16 }
  0x44   : > { %v229_v2 = vstv %s414_s23  ;;  %s419_s13 = sld [smem:[#allocation4 + $0x5]]  ;;  %p572_p8 = scmp.ne.s32.totalorder %s300_s10, %s571_s11 }
  0x45   : > { %v230_v3 = vmul.f32 %v229_v2, %v227_v0  ;;  %v231_v4 = vmul.f32 %v229_v2, %v228_v1  ;;  %v233_v5 = vstv %s232_s25  ;;  %s420_s14 = sld [smem:[#allocation4 + $0x6]]  ;;  %s662_s24 = smov [#allocation10]  }
  0x46   : > { %v238_v6 = vstv %s415_s6  ;;  %p573_p0 = pnand %p572_p8, %p737_p9  ;;  %s575_s23 = sshll.u32 %s662_s24, 4  ;;  %s576_s23 = int_to_ptr.vmem [resolvable:$false] %s575_s23 }
  0x47   : > { %v234_v7 = vsub.f32 %v230_v3, %v233_v5  ;;  %v239_v8 = vsub.f32 %v238_v6, %v230_v3  ;;  %v244_v9 = vstv %s416_s7  ;;  %s577_s18 = scalar_lea.vmem %s576_s23, 32  ;;  %p578_p13 = scmp.lt.s32.totalorder %s300_s10, %s576_s23 }
  0x48   : > { %v245_v10 = vsub.f32 %v231_v4, %v244_v9  ;;  %v250_v11 = vstv %s417_s9  ;;  %p574_p3 = pneg %p573_p0  ;;  %p579_p5 = scmp.lt.s32.totalorder %s577_s18, %s571_s11 }
  0x49   : > { %494 = vtanh.f32 %v234_v7  ;;  %v251_v12 = vsub.f32 %v250_v11, %v231_v4  ;;  %v271_v30 = vstv %s418_s26 }
  0x4a   : > { %496 = vtanh.f32 %v239_v8  ;;  %v274_v32 = vstv %s419_s13  ;;  %p580_p12 = por %p579_p5, %p578_p13 }
  0x4b   : > { %498 = vtanh.f32 %v245_v10  ;;  %v277_v34 = vstv %s420_s14 }
  0x4c   : > { %500 = vtanh.f32 %v251_v12  ;;  %p581_p6 = pnand %p580_p12, %p574_p3 }
  0x56   : > { %v495_v13 = vpop.eup %494 }
  0x57   : > { %v497_v14 = vpop.eup %496  ;;  %v236_v15 = vadd.f32 1.0, %v495_v13 }
  0x58   : > { %v499_v16 = vpop.eup %498  ;;  %v241_v17 = vadd.f32 1.0, %v497_v14 }
  0x59   : > { %v501_v18 = vpop.eup %500  ;;  %v247_v19 = vadd.f32 1.0, %v499_v16 }
  0x5a   : > { %v242_v20 = vmul.f32 %v241_v17, %v236_v15  ;;  %v253_v21 = vadd.f32 1.0, %v501_v18 }
  0x5c   : > { %v248_v22 = vmul.f32 %v247_v19, %v242_v20 }
  0x5e   : > { %v254_v23 = vmul.f32 %v253_v21, %v248_v22 }
  0x60   : > { %v262_v24 = vrot.slane %v254_v23, 4 }
  0x62   : > { %v263_v25 = vadd.f32 %v262_v24, %v254_v23 }
  0x64   : > { %v264_v26 = vrot.slane %v263_v25, 2 }
  0x66   : > { %v265_v27 = vadd.f32 %v264_v26, %v263_v25 }
  0x68   : > { %v266_v28 = vrot.slane %v265_v27, 1 }
  0x6a   : > { %v267_v29 = vadd.f32 %v266_v28, %v265_v27 }
  0x6c   : > { %268 = vadd.xlane.f32.xlu0 %v267_v29 }
  0xf5   : > { %v269_v31 = vpop.xlane.xlu0 %268 }
  0xf6   : > { %v272_v33 = vmul.f32 %v271_v30, %v269_v31 }
  0xf8   : > { %v275_v35 = vmul.f32 %v274_v32, %v272_v33 }
  0xfa   : > { %v278_v36 = vadd.f32 %v277_v34, %v275_v35 }
  0xfc   : > { %v279_v37 = vsub.f32 0.0, %v278_v36 }
  0xfe   : > { %v280_v38 = vmul.f32 1.442695, %v279_v37 }
 0x100   : > { %502 = vpow2.f32 %v280_v38 }
 0x10d   : > { %v503_v39 = vpop.eup %502 }
 0x10e   : > { %v282_v40 = vadd.f32 1.0, %v503_v39 }
 0x110   : > { %504 = vrcp.f32 %v282_v40 }
 0x11d   : > { %v505_v41 = vpop.eup %504 }
 0x11e   : > { %285 = vst [vmem:[%s220_s8] sm:$0x1] %v505_v41 }
 0x11f   : > { %584 = shalt.err (!%p581_p6)
}
 0x120   : > { %s585_s25 = scalar_lea.hbm %s812_s5, 16  ;;  %s589_s7 = scalar_lea.hbm %s857_s3, 32 }
 0x121   : > { %p586_p7 = scmp.ne.s32.totalorder %s812_s5, %s585_s25  ;;  %p590_p4 = scmp.lt.s32.totalorder %s812_s5, %s857_s3 }
 0x122   : > { %p591_p10 = scmp.lt.s32.totalorder %s589_s7, %s585_s25 }
 0x123   : > { %p587_p1 = pnand %p586_p7, %p737_p9 }
 0x124   : > { %p592_p8 = por %p591_p10, %p590_p4 }
 0x125   : > { %p588_p2 = pneg %p587_p1 }
 0x127   : > { %p593_p0 = pnand %p592_p8, %p588_p2 }
 0x129   : > { %596 = shalt.err (!%p593_p0)
}
 0x12a   : > { %430 = dma.vmem_to_hbm [thread:$0]  (%p737_p9), %s300_s10, 16, %s812_s5, %s287_s21  }
 0x12b PF: > { %s311_s13 = sand.u32 1, %s637_s15   ;;  %p864_p3 = scmp.ge.s32.totalorder %s657_s0, 2 }
 0x12c   : > { %s312_s14 = scalar_lea.sflag [#allocation7], %s311_s13 }
 0x12d   : > { %p440_p13 = pnand %p864_p3, %p744_p11 }
 0x12f   : > { %p441_p5 = pneg %p440_p13 }
 0x131   : > { %632 = dma.done.wait (%p441_p5), %s312_s14, 16  }
 0x132   : > { %634 = vsyncadd (%p441_p5), %s312_s14, 4294967280  ;;  %s26_s0 = sadd.s32 1, %s657_s0   ;;  %s865_s15 = smov %s641_s16 }
 0x133   : > { %p23_p12 = scmp.ge.s32.totalorder %s26_s0, 4   ;;  %s866_s16 = smov %s645_s17 }
 0x134   : > { %s867_s17 = smov %s742_s28  ;;  %s868_s18 = smov %s653_s19 }
 0x135   : > { %s869_s19 = smov %s871_s22  ;;  %25 = sbr.rel (!%p23_p12) target bundleno = 13 (0xd), region = 94 }
 0x13a   :  { %316 = vsyncpa [#allocation6], 1 }
 0x13b   :  { %318 = vsyncpa [#allocation6 + $0x1], 1 }
 0x13c   :  { %319 = vsyncpa [#allocation9], 1 }
 0x13d   :  { %321 = vsyncpa [#allocation9 + $0x1], 1 }
 0x13e   :  { %322 = vsyncpa [#allocation7], 1 }
 0x13f   :  { %324 = vsyncpa [#allocation7 + $0x1], 1 }

</bundles_post_ra>
